<compile_context>
chip_gen: v6e
topology: v6e:2x2x1
jax: 0.10.0
libtpu: 0.0.40
codegen_flags: <defaults>
</compile_context>

<pallas_src>
import jax
import jax.numpy as jnp
from jax.experimental import pallas as pl
from jax.experimental.pallas import tpu as pltpu


def _round_up(x, m):
    return ((x + m - 1) // m) * m


def _mlp_kernel(x_ref, w1_ref, b1_ref, w2_ref, b2_ref, o_ref):
    """relu(x @ W1 + b1) @ W2 + b2, fully fused in VMEM."""
    x = x_ref[...]                                   # (B_p, in_dim) f32
    in_dim = x_ref.shape[1]                          # static (4)

    # ---- Layer 1 on the VPU: in_dim is tiny, so a handful of broadcast
    # multiply-adds beats a K-padded MXU pass.
    h = x[:, 0:1] * w1_ref[0:1, :]                   # (B_p, hid_p)
    for k in range(1, in_dim):                       # static unroll
        h = h + x[:, k:k + 1] * w1_ref[k:k + 1, :]
    h = jnp.maximum(h + b1_ref[...], 0.0)            # bias + ReLU in f32

    # ---- Layer 2 on the MXU: bf16 operands, f32 accumulation.
    logits = jnp.dot(h.astype(jnp.bfloat16), w2_ref[...],
                     preferred_element_type=jnp.float32)
    o_ref[...] = (logits + b2_ref[...]).astype(o_ref.dtype)


@jax.jit
def pi_forward_padded(x, w1_p, b1_p, w2_p, b2_p):
    """Padded forward: x [B, in_dim] f32 -> padded logits [B_p, out_p] f32.

    Real logits live in [:B, :out_dim]; padded rows / lanes are exactly zero.
    Weights arrive pre-padded (see prepare_padded_params) -- the only per-call
    wrapper work is padding the tiny activation batch to 8 sublanes.
    """
    B, in_dim = x.shape
    B_p = _round_up(max(B, 8), 8)
    out_p = w2_p.shape[1]

    x_p = jnp.zeros((B_p, in_dim), jnp.float32).at[:B, :].set(x)

    vmem = pl.BlockSpec(memory_space=pltpu.MemorySpace.VMEM)
    return pl.pallas_call(
        _mlp_kernel,
        out_shape=jax.ShapeDtypeStruct((B_p, out_p), jnp.float32),
        in_specs=[vmem, vmem, vmem, vmem, vmem],
        out_specs=vmem,
    )(x_p, w1_p, b1_p, w2_p, b2_p)


def pi_forward(x, padded_params, out_dim):
    """Convenience wrapper returning exactly [B, out_dim] logits."""
    out = pi_forward_padded(x, *padded_params)
    return out[: x.shape[0], :out_dim]


def init_pi_params(key, in_dim, hidden, out_dim):
    """PyTorch nn.Linear default init (uniform +/- 1/sqrt(fan_in)).

    Weights stored as [in_features, out_features] (transpose of torch's
    [out, in]) so the kernel does plain row-major matmuls.
    """
    k1, k2, k3, k4 = jax.random.split(key, 4)
    lim1 = 1.0 / jnp.sqrt(jnp.float32(in_dim))
    lim2 = 1.0 / jnp.sqrt(jnp.float32(hidden))
    w1 = jax.random.uniform(k1, (in_dim, hidden), jnp.float32, -lim1, lim1)
    b1 = jax.random.uniform(k2, (hidden,), jnp.float32, -lim1, lim1)
    w2 = jax.random.uniform(k3, (hidden, out_dim), jnp.float32, -lim2, lim2)
    b2 = jax.random.uniform(k4, (out_dim,), jnp.float32, -lim2, lim2)
    return w1, b1, w2, b2


def prepare_padded_params(w1, b1, w2, b2):
    """One-time padding / casting to TPU-friendly shapes (NOT per forward).

      w1: (in_dim, hid_p) f32  -- K axis left at in_dim (layer 1 is on VPU)
      b1: (1, hid_p)      f32
      w2: (hid_p, out_p)  bf16 -- MXU operands; accumulation stays f32
      b2: (1, out_p)      f32
    Zero padding is mathematically inert (ReLU keeps padded lanes at 0).
    """
    in_dim, hidden = w1.shape
    out_dim = w2.shape[1]
    hid_p = _round_up(hidden, 128)
    out_p = _round_up(out_dim, 128)

    w1_p = jnp.zeros((in_dim, hid_p), jnp.float32).at[:, :hidden].set(w1)
    b1_p = jnp.zeros((1, hid_p), jnp.float32).at[:, :hidden].set(b1[None, :])
    w2_p = jnp.zeros((hid_p, out_p), jnp.bfloat16).at[:hidden, :out_dim].set(
        w2.astype(jnp.bfloat16))
    b2_p = jnp.zeros((1, out_p), jnp.float32).at[:, :out_dim].set(b2[None, :])
    return w1_p, b1_p, w2_p, b2_p


if __name__ == "__main__":
    # CartPole: observation dim = 4, action dim = 2, hidden = 64 (per module).
    in_dim, hidden, out_dim = 4, 64, 2
    batch = 2

    key = jax.random.PRNGKey(0)
    k_params, k_x = jax.random.split(key)
    w1, b1, w2, b2 = init_pi_params(k_params, in_dim, hidden, out_dim)
    x = jax.random.normal(k_x, (batch, in_dim), jnp.float32)

    # One-time parameter prep (padding + bf16 cast), hoisted out of the
    # per-step forward path.
    padded_params = jax.block_until_ready(prepare_padded_params(w1, b1, w2, b2))

    logits = pi_forward(x, padded_params, out_dim)
    jax.block_until_ready(logits)

    # Pure-JAX f32 reference.  The kernel's second matmul uses bf16 operands
    # (f32 accumulation), so allow ~1e-2 slack vs. the f32 reference.
    ref = jnp.maximum(x @ w1 + b1, 0.0) @ w2 + b2
    assert logits.shape == (batch, out_dim)
    assert jnp.allclose(logits, ref, atol=1e-2, rtol=1e-2), (
        "max abs diff: %f" % float(jnp.max(jnp.abs(logits - ref))))

    # TODO(synk): Categorical sampling / log_prob bookkeeping in Pi.act() is
    # host-side RL plumbing, intentionally not part of the forward kernel.
    print("KERNEL_OK")
</pallas_src>

<mosaic_0001>
module attributes {stable_mosaic.version = 11 : i64} {
  func.func @_mlp_kernel(%arg0: memref<8x4xf32, #tpu.memory_space<vmem>>, %arg1: memref<4x128xf32, #tpu.memory_space<vmem>>, %arg2: memref<1x128xf32, #tpu.memory_space<vmem>>, %arg3: memref<128x128xbf16, #tpu.memory_space<vmem>>, %arg4: memref<1x128xf32, #tpu.memory_space<vmem>>, %arg5: memref<8x128xf32, #tpu.memory_space<vmem>>) attributes {dimension_semantics = [], scalar_prefetch = 0 : i64, scratch_operands = 0 : i64, tpu.core_type = #tpu.core_type<tc>} {
    %c0 = arith.constant 0 : index
    %c0_0 = arith.constant 0 : index
    %0 = vector.load %arg0[%c0, %c0_0] : memref<8x4xf32, #tpu.memory_space<vmem>>, vector<8x4xf32>
    %1 = vector.extract_strided_slice %0 {offsets = [0, 0], sizes = [8, 1], strides = [1, 1]} : vector<8x4xf32> to vector<8x1xf32>
    %c0_1 = arith.constant 0 : index
    %c0_2 = arith.constant 0 : index
    %2 = vector.load %arg1[%c0_1, %c0_2] : memref<4x128xf32, #tpu.memory_space<vmem>>, vector<1x128xf32>
    %3 = vector.broadcast %1 : vector<8x1xf32> to vector<8x128xf32>
    %4 = vector.broadcast %2 : vector<1x128xf32> to vector<8x128xf32>
    %5 = arith.mulf %3, %4 : vector<8x128xf32>
    %6 = vector.extract_strided_slice %0 {offsets = [0, 1], sizes = [8, 1], strides = [1, 1]} : vector<8x4xf32> to vector<8x1xf32>
    %c1 = arith.constant 1 : index
    %c0_3 = arith.constant 0 : index
    %7 = vector.load %arg1[%c1, %c0_3] : memref<4x128xf32, #tpu.memory_space<vmem>>, vector<1x128xf32>
    %8 = vector.broadcast %6 : vector<8x1xf32> to vector<8x128xf32>
    %9 = vector.broadcast %7 : vector<1x128xf32> to vector<8x128xf32>
    %10 = arith.mulf %8, %9 : vector<8x128xf32>
    %11 = arith.addf %5, %10 : vector<8x128xf32>
    %12 = vector.extract_strided_slice %0 {offsets = [0, 2], sizes = [8, 1], strides = [1, 1]} : vector<8x4xf32> to vector<8x1xf32>
    %c2 = arith.constant 2 : index
    %c0_4 = arith.constant 0 : index
    %13 = vector.load %arg1[%c2, %c0_4] : memref<4x128xf32, #tpu.memory_space<vmem>>, vector<1x128xf32>
    %14 = vector.broadcast %12 : vector<8x1xf32> to vector<8x128xf32>
    %15 = vector.broadcast %13 : vector<1x128xf32> to vector<8x128xf32>
    %16 = arith.mulf %14, %15 : vector<8x128xf32>
    %17 = arith.addf %11, %16 : vector<8x128xf32>
    %18 = vector.extract_strided_slice %0 {offsets = [0, 3], sizes = [8, 1], strides = [1, 1]} : vector<8x4xf32> to vector<8x1xf32>
    %c3 = arith.constant 3 : index
    %c0_5 = arith.constant 0 : index
    %19 = vector.load %arg1[%c3, %c0_5] : memref<4x128xf32, #tpu.memory_space<vmem>>, vector<1x128xf32>
    %20 = vector.broadcast %18 : vector<8x1xf32> to vector<8x128xf32>
    %21 = vector.broadcast %19 : vector<1x128xf32> to vector<8x128xf32>
    %22 = arith.mulf %20, %21 : vector<8x128xf32>
    %23 = arith.addf %17, %22 : vector<8x128xf32>
    %c0_6 = arith.constant 0 : index
    %c0_7 = arith.constant 0 : index
    %24 = vector.load %arg2[%c0_6, %c0_7] : memref<1x128xf32, #tpu.memory_space<vmem>>, vector<1x128xf32>
    %25 = vector.broadcast %24 : vector<1x128xf32> to vector<8x128xf32>
    %26 = arith.addf %23, %25 : vector<8x128xf32>
    %cst = arith.constant 0.000000e+00 : f32
    %27 = vector.broadcast %cst : f32 to vector<8x128xf32>
    %28 = arith.maximumf %26, %27 : vector<8x128xf32>
    %29 = arith.truncf %28 : vector<8x128xf32> to vector<8x128xbf16>
    %c0_8 = arith.constant 0 : index
    %c0_9 = arith.constant 0 : index
    %30 = vector.load %arg3[%c0_8, %c0_9] : memref<128x128xbf16, #tpu.memory_space<vmem>>, vector<128x128xbf16>
    %cst_10 = arith.constant dense<0.000000e+00> : vector<8x128xf32>
    %31 = tpu.matmul %29, %30, %cst_10 {dimension_numbers = #tpu.dot_dimension_numbers<[1], [0], [0], [1], [0, 0, 1, 1], [], []>} : vector<8x128xbf16>, vector<128x128xbf16>, vector<8x128xf32> -> vector<8x128xf32>
    %c0_11 = arith.constant 0 : index
    %c0_12 = arith.constant 0 : index
    %32 = vector.load %arg4[%c0_11, %c0_12] : memref<1x128xf32, #tpu.memory_space<vmem>>, vector<1x128xf32>
    %33 = vector.broadcast %32 : vector<1x128xf32> to vector<8x128xf32>
    %34 = arith.addf %31, %33 : vector<8x128xf32>
    %c0_13 = arith.constant 0 : index
    %c0_14 = arith.constant 0 : index
    %35 = vector.load %arg5[%c0_13, %c0_14] : memref<8x128xf32, #tpu.memory_space<vmem>>, vector<8x128xf32>
    tpu.vector_store %arg5[%c0_13, %c0_14], %34 {strides = array<i32>} : memref<8x128xf32, #tpu.memory_space<vmem>>, vector<8x128xf32>,
    return
  }
}

</mosaic_0001>

<bundles_post_ra>
// kernel: pi_forward_padded.1
= control target key start
LH: loop header
LB: loop body
LE: loop exit
PB: predicated region body
PF: predicated region fallthrough
CT: control target
= control target key end

     0   :  { %10 = vsyncpa [#allocation3], 0  ;;  %s395_s0 = inlined_call_operand.vmem [shape: f32[8,4], index: 0, kind: input, shape index: {}]   ;;  %s396_s1 = inlined_call_operand.vmem [shape: f32[4,128], index: 1, kind: input, shape index: {}]   ;;  %s397_s2 = inlined_call_operand.vmem [shape: f32[1,128], index: 2, kind: input, shape index: {}]   ;;  %s398_s3 = inlined_call_operand.hbm [shape: bf16[128,128], index: 3, kind: input, shape index: {}]   ;;  %s399_s4 = inlined_call_operand.vmem [shape: f32[1,128], index: 4, kind: input, shape index: {}]   ;;  %s400_s5 = inlined_call_operand.hbm [shape: f32[8,128], index: 5, kind: output, shape index: {}]  }
   0x1   :  { %11 = vsyncpa [#allocation4], 0  ;;  %s328_s18 = smov [#allocation2]  }
   0x2   :  { %s23_s19 = sshll.u32 %s328_s18, 4  ;;  %s24_s19 = int_to_ptr.vmem [resolvable:$true] %s23_s19 }
   0x3   :  { %s292_s20 = scalar_lea.vmem %s24_s19, 1024  ;;  %p297_p1 = scmp.lt.s32.totalorder %s24_s19, %s24_s19 }
   0x4   :  { %p293_p0 = scmp.ne.s32.totalorder %s24_s19, %s292_s20  ;;  %p298_p2 = scmp.lt.s32.totalorder %s292_s20, %s292_s20 }
   0x6   :  { %p299_p3 = por %p298_p2, %p297_p1 }
   0x8   :  { %p300_p4 = pnand %p299_p3, %p293_p0 }
   0xa   :  { %303 = shalt.err (!%p300_p4)
}
   0xb   :  { %s329_s21 = smov 64   ;;  %s330_s22 = smov 4  }
   0xc   :  { %29 = dma.hbm_to_vmem [thread:$0]  %s398_s3, 1024, %s24_s19, [#allocation3], %s329_s21, %s329_s21, %s330_s22  }
   0xd   :  { %324 = dma.done.wait [#allocation3], 1024  }
   0xe   :  { %325 = vsyncadd [#allocation3], 4294966272  ;;  %v331_v0 = vmov 0   ;;  %v332_v1 = vmov 2   ;;  %v333_v2 = vmov 0.0   ;;  %v36_v3 = vld [vmem:[%s395_s0] sm:$0xff] }
   0xf   :  { %271 = vset.pattern.permute.xlu0 %v331_v0  ;;  %273 = vset.pattern.permute.xlu1 %v332_v1  ;;  %v276_v4 = vld [vmem:[#allocation2 + $0x38] sm:$0xff]   ;;  %v277_v5 = vld [vmem:[#allocation2 + $0x30] sm:$0xff]   ;;  %v334_v6 = vmov 1   ;;  %v335_v7 = vmov 3   ;;  %v278_v8 = vld [vmem:[#allocation2 + $0x28] sm:$0xff]   ;;  %vm336_vm0 = vmmov 0  }
  0x10   :  { %241 = vmatprep.subr.bf16.mxu0 %v333_v2  ;;  %40 = vperm.xlu0 %271, %v36_v3   ;;  %v279_v9 = vld [vmem:[#allocation2 + $0x20] sm:$0xff]   ;;  %v280_v10 = vld [vmem:[#allocation2 + $0x18] sm:$0xff]   ;;  %v281_v11 = vld [vmem:[#allocation2 + $0x10] sm:$0xff]  }
  0x11   :  { %61 = vperm.xlu1 %273, %v36_v3   ;;  %242 = vmatpush3.bf16.msra.mxu0 %v276_v4  ;;  %v282_v12 = vld [vmem:[#allocation2 + $0x8] sm:$0xff]   ;;  %v283_v13 = vld [vmem:[#allocation2] sm:$0xff]  }
  0x12   :  { %243 = vmatprep.subr.bf16.mxu0 %v333_v2  ;;  %257 = vmatprep.mubr.msk.bf16.mxu0 %vm336_vm0, %v333_v2  ;;  %v218_v16 = vld [vmem:[%s396_s1] ss:$0 sm:$0xff]  ;;  %v219_v17 = vld [vmem:[%s396_s1 + $0x1] ss:$0 sm:$0xff]  ;;  %v220_v18 = vld [vmem:[%s396_s1 + $0x2] ss:$0 sm:$0xff] }
  0x13   :  { %v221_v20 = vld [vmem:[%s396_s1 + $0x3] ss:$0 sm:$0xff]  ;;  %v222_v28 = vld [vmem:[%s397_s2] ss:$0 sm:$0xff]  ;;  %s337_s1 = smov [#allocation5]  }
  0x14   :  { %272 = vset.pattern.permute.xlu0 %v334_v6  ;;  %v223_v33 = vld [vmem:[%s399_s4] ss:$0 sm:$0xff]  ;;  %s209_s12 = sshll.u32 %s337_s1, 4  ;;  %s210_s12 = int_to_ptr.vmem [resolvable:$true] %s209_s12 }
  0x15   :  { %274 = vset.pattern.permute.xlu1 %v335_v7  ;;  %50 = vperm.xlu0 %272, %v36_v3   ;;  %s304_s13 = scalar_lea.vmem %s210_s12, 128  ;;  %p309_p6 = scmp.lt.s32.totalorder %s210_s12, %s210_s12 }
  0x16   :  { %72 = vperm.xlu1 %274, %v36_v3   ;;  %244 = vmatpush3.bf16.msra.mxu0 %v277_v5  ;;  %p305_p5 = scmp.ne.s32.totalorder %s210_s12, %s304_s13  ;;  %p310_p7 = scmp.lt.s32.totalorder %s304_s13, %s304_s13 }
  0x17   :  { %245 = vmatprep.subr.bf16.mxu0 %v333_v2 }
  0x18   :  { %p311_p8 = por %p310_p7, %p309_p6 }
  0x19   :  { %275 = vset.pattern.permute.xlu0 %v335_v7 }
  0x1a   :  { %246 = vmatpush3.bf16.msra.mxu0 %v278_v8  ;;  %p312_p9 = pnand %p311_p8, %p305_p5 }
  0x1b   :  { %247 = vmatprep.subr.bf16.mxu0 %v333_v2 }
  0x1e   :  { %248 = vmatpush3.bf16.msra.mxu0 %v279_v9 }
  0x1f   :  { %249 = vmatprep.subr.bf16.mxu0 %v333_v2 }
  0x22   :  { %250 = vmatpush3.bf16.msra.mxu0 %v280_v10 }
  0x23   :  { %251 = vmatprep.subr.bf16.mxu0 %v333_v2 }
  0x26   :  { %252 = vmatpush3.bf16.msra.mxu0 %v281_v11 }
  0x27   :  { %253 = vmatprep.subr.bf16.mxu0 %v333_v2 }
  0x2a   :  { %254 = vmatpush3.bf16.msra.mxu0 %v282_v12 }
  0x2b   :  { %255 = vmatprep.subr.bf16.mxu0 %v333_v2 }
  0x2e   :  { %256 = vmatpush3.bf16.msra.mxu0 %v283_v13 }
  0x8b   :  { %v41_v14 = vpop.permute.xlu0 %40 }
  0x8c   :  { %v62_v15 = vpop.permute.xlu1 %61  ;;  %v47_v22 = vmul.f32 %v218_v16, %v41_v14 }
  0x8d   :  { %v68_v24 = vmul.f32 %v220_v18, %v62_v15 }
  0x90   :  { %v51_v19 = vpop.permute.xlu0 %50 }
  0x91   :  { %v73_v21 = vpop.permute.xlu1 %72  ;;  %v57_v23 = vmul.f32 %v219_v17, %v51_v19 }
  0x92   :  { %v79_v26 = vmul.f32 %v221_v20, %v73_v21 }
  0x93   :  { %v58_v25 = vadd.f32 %v57_v23, %v47_v22 }
  0x95   :  { %v69_v27 = vadd.f32 %v68_v24, %v58_v25 }
  0x97   :  { %v80_v29 = vadd.f32 %v79_v26, %v69_v27 }
  0x99   :  { %v88_v30 = vadd.f32 %v222_v28, %v80_v29 }
  0x9b   :  { %v89_v31 = vmax.f32 %v88_v30, 0.0 }
  0x9d   :  { %v90_v32 = vpack.c.bf16 %v89_v31, %v89_v31 }
  0x9f   :  { %258 = vmatmul.mubr.bf16.vlgmr.msra.gmra.mxu0 %v90_v32 }
 0x15f   :  { %v196_v34 = vpop.f32.mrf.mxu0 }
 0x160   :  { %v197_v35 = vadd.f32 %v223_v33, %v196_v34 }
 0x161   :  { %v259_v36 = vpop.f32.mrf.mxu0 }
 0x162   :  { %202 = vst [vmem:[#allocation5] sm:$0xff] %v197_v35 }
 0x163   :  { %v199_v37 = vpop.f32.mrf.mxu0 }
 0x164   :  { %315 = shalt.err (!%p312_p9)
}
 0x165   :  { %212 = dma.vmem_to_hbm [thread:$0]  %s210_s12, 128, %s400_s5, [#allocation4]   ;;  %v260_v38 = vpop.f32.mrf.mxu0 }
 0x166   :  { %326 = dma.done.wait [#allocation4], 128  }
 0x167   :  { %327 = vsyncadd [#allocation4], 4294967168 }
 0x168   :  { %216 = vsyncpa [#allocation3], 1 }
 0x169   :  { %217 = vsyncpa [#allocation4], 1 }

</bundles_post_ra>
